<compile_context>
chip_gen: v6e
topology: v6e:2x2x1
jax: 0.10.0
libtpu: 0.0.40
codegen_flags: <defaults>
</compile_context>

<pallas_src>
import math

import jax
import jax.numpy as jnp
from jax.experimental import pallas as pl
from jax.experimental.pallas import tpu as pltpu


def pos_emb_kernel(x_ref, gain_ref, phase_ref, sel_ref, o_ref):
    # x_ref:     (TB, 1)       f32 timesteps (one per row)
    # gain_ref:  (1, dim + 1)  f32 [0 | 2*pi*w | 2*pi*w]
    # phase_ref: (1, dim + 1)  f32 [0 | 0..0   | pi/2..pi/2]
    # sel_ref:   (1, dim + 1)  f32 [1 | 0..0   | 0..0]
    # o_ref:     (TB, dim + 1)
    x = x_ref[...]                                   # (TB, 1)
    theta = x * gain_ref[...] + phase_ref[...]       # (TB, dim+1) lane broadcast (VPU)
    v = jnp.sin(theta)                               # single EUP pass: cos via +pi/2 phase
    # col 0: gain=phase=0 -> sin(0)=0, then + x*sel injects x exactly.
    o_ref[...] = (v + x * sel_ref[...]).astype(o_ref.dtype)   # one full-width store


def random_or_learned_sinusoidal_pos_emb(x, weights, *, block_b=512):
    """x: (B,) timesteps; weights: (half_dim,). Returns (B, 2*half_dim + 1)."""
    b = x.shape[0]
    half_dim = weights.shape[0]
    dim = 2 * half_dim
    width = dim + 1

    # Precompute per-column gain / phase / x-selector rows (2*pi folded in).
    w = weights.astype(jnp.float32) * (2.0 * math.pi)
    zero1 = jnp.zeros((1,), jnp.float32)
    gain = jnp.concatenate([zero1, w, w]).reshape(1, width)
    phase = jnp.concatenate(
        [jnp.zeros((1 + half_dim,), jnp.float32),
         jnp.full((half_dim,), 0.5 * math.pi, jnp.float32)]).reshape(1, width)
    sel = jnp.concatenate(
        [jnp.ones((1,), jnp.float32), jnp.zeros((dim,), jnp.float32)]).reshape(1, width)

    # Tile the batch only when it is big enough to amortize per-step overhead;
    # at tiny B a grid would be pure loss, so use one whole-array block.
    if b > block_b:
        tb = block_b                       # multiple of 8 (sublane aligned)
        b_pad = pl.cdiv(b, tb) * tb
    else:
        tb = b
        b_pad = b

    x2 = x.reshape(b, 1).astype(jnp.float32)
    if b_pad != b:
        x2 = jnp.pad(x2, ((0, b_pad - b), (0, 0)))

    out = pl.pallas_call(
        pos_emb_kernel,
        out_shape=jax.ShapeDtypeStruct((b_pad, width), jnp.float32),
        grid=(b_pad // tb,),
        in_specs=[
            pl.BlockSpec((tb, 1), lambda i: (i, 0)),
            pl.BlockSpec((1, width), lambda i: (0, 0)),
            pl.BlockSpec((1, width), lambda i: (0, 0)),
            pl.BlockSpec((1, width), lambda i: (0, 0)),
        ],
        out_specs=pl.BlockSpec((tb, width), lambda i: (i, 0)),
        compiler_params=pltpu.CompilerParams(dimension_semantics=("parallel",)),
    )(x2, gain, phase, sel)

    return out[:b] if b_pad != b else out


def pos_emb_reference(x, weights):
    """Plain JAX reference matching the PyTorch module semantics."""
    x2 = x[:, None].astype(jnp.float32)
    freqs = x2 * weights[None, :].astype(jnp.float32) * 2.0 * math.pi
    fouriered = jnp.concatenate([jnp.sin(freqs), jnp.cos(freqs)], axis=-1)
    return jnp.concatenate([x2, fouriered], axis=-1)


if __name__ == "__main__":
    # Small shapes consistent with the module: batch of 2 scalar timesteps,
    # dim = 32 (must be even) -> half_dim = 16, output (2, 33).
    B, DIM = 2, 32
    HALF_DIM = DIM // 2

    key = jax.random.PRNGKey(0)
    kx, kw, kx2 = jax.random.split(key, 3)
    x = jax.random.uniform(kx, (B,), dtype=jnp.float32, minval=0.0, maxval=1.0)
    weights = jax.random.normal(kw, (HALF_DIM,), dtype=jnp.float32)  # torch.randn(half_dim)

    y = random_or_learned_sinusoidal_pos_emb(x, weights)
    jax.block_until_ready(y)
    y_ref = pos_emb_reference(x, weights)
    assert y.shape == (B, DIM + 1)
    assert jnp.allclose(y, y_ref, rtol=1e-5, atol=1e-5), "mismatch vs reference (small B)"

    # Also exercise the gridded large-B path (tiled + padded batch).
    B_LARGE = 1000
    x_large = jax.random.uniform(kx2, (B_LARGE,), dtype=jnp.float32, minval=0.0, maxval=1.0)
    y_large = random_or_learned_sinusoidal_pos_emb(x_large, weights)
    jax.block_until_ready(y_large)
    y_large_ref = pos_emb_reference(x_large, weights)
    assert y_large.shape == (B_LARGE, DIM + 1)
    assert jnp.allclose(y_large, y_large_ref, rtol=1e-5, atol=1e-5), "mismatch vs reference (large B)"

    print("KERNEL_OK")
</pallas_src>

<mosaic_0001>
module attributes {stable_mosaic.version = 11 : i64} {
  func.func @pos_emb_kernel(%arg0: i32, %arg1: memref<2x1xf32, #tpu.memory_space<vmem>>, %arg2: memref<1x33xf32, #tpu.memory_space<vmem>>, %arg3: memref<1x33xf32, #tpu.memory_space<vmem>>, %arg4: memref<1x33xf32, #tpu.memory_space<vmem>>, %arg5: memref<2x33xf32, #tpu.memory_space<vmem>>) attributes {dimension_semantics = [#tpu.dimension_semantics<parallel>], iteration_bounds = array<i64: 1>, scalar_prefetch = 0 : i64, scratch_operands = 0 : i64, tpu.core_type = #tpu.core_type<tc>, window_params = [{transform_indices = @transform_0, window_bounds = array<i64: 2, 1>}, {pipeline_mode = #tpu.pipeline_mode<synchronous>, transform_indices = @transform_1, window_bounds = array<i64: 1, 33>}, {pipeline_mode = #tpu.pipeline_mode<synchronous>, transform_indices = @transform_2, window_bounds = array<i64: 1, 33>}, {pipeline_mode = #tpu.pipeline_mode<synchronous>, transform_indices = @transform_3, window_bounds = array<i64: 1, 33>}, {transform_indices = @transform_4, window_bounds = array<i64: 2, 33>}]} {
    %c0 = arith.constant 0 : index
    %c0_0 = arith.constant 0 : index
    %0 = vector.load %arg1[%c0, %c0_0] : memref<2x1xf32, #tpu.memory_space<vmem>>, vector<2x1xf32>
    %c0_1 = arith.constant 0 : index
    %c0_2 = arith.constant 0 : index
    %1 = vector.load %arg2[%c0_1, %c0_2] : memref<1x33xf32, #tpu.memory_space<vmem>>, vector<1x33xf32>
    %2 = vector.broadcast %0 : vector<2x1xf32> to vector<2x33xf32>
    %3 = vector.broadcast %1 : vector<1x33xf32> to vector<2x33xf32>
    %4 = arith.mulf %2, %3 : vector<2x33xf32>
    %c0_3 = arith.constant 0 : index
    %c0_4 = arith.constant 0 : index
    %5 = vector.load %arg3[%c0_3, %c0_4] : memref<1x33xf32, #tpu.memory_space<vmem>>, vector<1x33xf32>
    %6 = vector.broadcast %5 : vector<1x33xf32> to vector<2x33xf32>
    %7 = arith.addf %4, %6 : vector<2x33xf32>
    %8 = math.sin %7 : vector<2x33xf32>
    %c0_5 = arith.constant 0 : index
    %c0_6 = arith.constant 0 : index
    %9 = vector.load %arg4[%c0_5, %c0_6] : memref<1x33xf32, #tpu.memory_space<vmem>>, vector<1x33xf32>
    %10 = vector.broadcast %0 : vector<2x1xf32> to vector<2x33xf32>
    %11 = vector.broadcast %9 : vector<1x33xf32> to vector<2x33xf32>
    %12 = arith.mulf %10, %11 : vector<2x33xf32>
    %13 = arith.addf %8, %12 : vector<2x33xf32>
    %c0_7 = arith.constant 0 : index
    %c0_8 = arith.constant 0 : index
    %14 = vector.load %arg5[%c0_7, %c0_8] : memref<2x33xf32, #tpu.memory_space<vmem>>, vector<2x33xf32>
    tpu.vector_store %arg5[%c0_7, %c0_8], %13 {strides = array<i32>} : memref<2x33xf32, #tpu.memory_space<vmem>>, vector<2x33xf32>,
    return
  }
  func.func @transform_0(%arg0: i32) -> (i32, i32) {
    %c0_i32 = arith.constant 0 : i32
    %c0_i32_0 = arith.constant 0 : i32
    return %arg0, %c0_i32 : i32, i32
  }
  func.func @transform_1(%arg0: i32) -> (i32, i32) {
    %c0_i32 = arith.constant 0 : i32
    %c0_i32_0 = arith.constant 0 : i32
    %c0_i32_1 = arith.constant 0 : i32
    return %c0_i32, %c0_i32_0 : i32, i32
  }
  func.func @transform_2(%arg0: i32) -> (i32, i32) {
    %c0_i32 = arith.constant 0 : i32
    %c0_i32_0 = arith.constant 0 : i32
    %c0_i32_1 = arith.constant 0 : i32
    return %c0_i32, %c0_i32_0 : i32, i32
  }
  func.func @transform_3(%arg0: i32) -> (i32, i32) {
    %c0_i32 = arith.constant 0 : i32
    %c0_i32_0 = arith.constant 0 : i32
    %c0_i32_1 = arith.constant 0 : i32
    return %c0_i32, %c0_i32_0 : i32, i32
  }
  func.func @transform_4(%arg0: i32) -> (i32, i32) {
    %c0_i32 = arith.constant 0 : i32
    %c0_i32_0 = arith.constant 0 : i32
    return %arg0, %c0_i32 : i32, i32
  }
}

</mosaic_0001>

<bundles_post_ra>
// kernel: tpu_custom_call.1
= control target key start
LH: loop header
LB: loop body
LE: loop exit
PB: predicated region body
PF: predicated region fallthrough
CT: control target
= control target key end

     0   :  { %v215_v1 = vmov 0   ;;  %s288_s0 = inlined_call_operand.vmem [shape: f32[2,1], index: 0, kind: input, shape index: {}]   ;;  %s289_s1 = inlined_call_operand.vmem [shape: f32[1,33], index: 1, kind: input, shape index: {}]   ;;  %s290_s2 = inlined_call_operand.vmem [shape: f32[1,33], index: 2, kind: input, shape index: {}]   ;;  %s291_s3 = inlined_call_operand.vmem [shape: f32[1,33], index: 3, kind: input, shape index: {}]   ;;  %s292_s4 = inlined_call_operand.hbm [shape: f32[2,33], index: 4, kind: output, shape index: {}]  }
   0x1   :  { %v18_v0 = vld [vmem:[%s288_s0] sm:$0x3]  ;;  %188 = vset.pattern.permute.xlu0 %v215_v1 }
   0x2   :  { %22 = vperm.xlu0 %188, %v18_v0  }
   0x3   :  { %9 = vsyncpa [#allocation3], 0  ;;  %v169_v2 = vld [vmem:[%s289_s1] ss:$0 sm:$0xff]  ;;  %v216_v17 = vmov 683565275  }
   0x4   :  { %v170_v3 = vld [vmem:[%s290_s2] ss:$0 sm:$0xff]  ;;  %v217_v19 = vmov 2475754826   ;;  %v218_v22 = vmov 2131351028  }
   0x5   :  { %v219_v25 = vmov 2102212464   ;;  %v220_v28 = vmov 920167782   ;;  %v221_v31 = vmov 1326507024  }
   0x6   :  { %s222_s2 = smov [#allocation2]   ;;  %vm153_vm13 = vcmask 263168  }
   0x7   :  { %s161_s21 = sshll.u32 %s222_s2, 4  ;;  %s162_s21 = int_to_ptr.vmem [resolvable:$true] %s161_s21 }
   0x8   :  { %s193_s22 = scalar_lea.vmem %s162_s21, 32  ;;  %p198_p1 = scmp.lt.s32.totalorder %s162_s21, %s162_s21 }
   0x9   :  { %p194_p0 = scmp.ne.s32.totalorder %s162_s21, %s193_s22  ;;  %p199_p2 = scmp.lt.s32.totalorder %s193_s22, %s193_s22 }
   0xb   :  { %p200_p3 = por %p199_p2, %p198_p1 }
   0xd   :  { %p201_p4 = pnand %p200_p3, %p194_p0 }
  0x7d   :  { %v257_v4 = vpop.permute.xlu0 %22 }
  0x7e   :  { %v31_v5 = vmul.f32 %v169_v2, %v257_v4 }
  0x80   :  { %v260_v6 = vadd.f32 %v170_v3, %v31_v5 }
  0x82   :  { %v43_v7 = vand.u32 2139095040, %v260_v6  ;;  %v40_v11 = vand.u32 2147483647, %v260_v6  ;;  %vm42_vm7 = vcmp.lt.s32.totalorder %v260_v6, 0  ;;  %vm132_vm12 = vweird.f32 %v260_v6 }
  0x84   :  { %v44_v8 = vshrl.u32 %v43_v7, 23  ;;  %v47_v14 = vand.u32 8388607, %v40_v11  ;;  %vm41_vm8 = vcmp.le.f32.partialorder %v40_v11, 0.7853982 }
  0x86   :  { %v171_v9 = vadd.s32 4294967169, %v44_v8  ;;  %v48_v33 = vor.u32 8388608, %v47_v14 }
  0x88   :  { %v50_v10 = vadd.s32 1, %v171_v9  ;;  %v88_v47 = vshll.u32 %v48_v33, 8 }
  0x8a   :  { %vm51_vm0 = vcmp.gt.s32.totalorder %v50_v10, 0 }
  0x8b   :  { %v52_v12 = vsel %vm51_vm0, %v50_v10, 0 }
  0x8c   :  { %v54_v13 = vand.u32 31, %v52_v12  ;;  %v53_v16 = vshrl.u32 %v52_v12, 5 }
  0x8e   :  { %v55_v15 = vsub.s32 32, %v54_v13  ;;  %v57_v18 = vshll.u32 %v216_v17, %v54_v13  ;;  %v60_v20 = vshll.u32 %v217_v19, %v54_v13  ;;  %v63_v24 = vshll.u32 %v218_v22, %v54_v13 }
  0x8f   :  { %v66_v27 = vshll.u32 %v219_v25, %v54_v13  ;;  %v69_v30 = vshll.u32 %v220_v28, %v54_v13  ;;  %vm72_vm1 = vcmp.lt.s32.totalorder %v53_v16, 1  ;;  %vm75_vm2 = vcmp.lt.s32.totalorder %v53_v16, 4 }
  0x90   :  { %v58_v21 = vshrl.u32 %v217_v19, %v55_v15  ;;  %v61_v23 = vshrl.u32 %v218_v22, %v55_v15  ;;  %v64_v26 = vshrl.u32 %v219_v25, %v55_v15  ;;  %v67_v29 = vshrl.u32 %v220_v28, %v55_v15 }
  0x91   :  { %v70_v32 = vshrl.u32 %v221_v31, %v55_v15  ;;  %v56_v42 = vshrl.u32 %v216_v17, %v55_v15  ;;  %vm74_vm3 = vcmp.lt.s32.totalorder %v53_v16, 3  ;;  %vm73_vm4 = vcmp.lt.s32.totalorder %v53_v16, 2 }
  0x92   :  { %v59_v34 = vor.u32 %v58_v21, %v57_v18  ;;  %v62_v35 = vor.u32 %v61_v23, %v60_v20  ;;  %v65_v36 = vor.u32 %v64_v26, %v63_v24  ;;  %v68_v37 = vor.u32 %v67_v29, %v66_v27 }
  0x93   :  { %v71_v38 = vor.u32 %v70_v32, %v69_v30  ;;  %v175_v32 = vld [vmem:[%s291_s3] ss:$0 sm:$0xff] }
  0x94   :  { %v77_v39 = vsel %vm75_vm2, %v65_v36, 2102212464  ;;  %v80_v40 = vsel %vm72_vm1, %v59_v34, %v62_v35  ;;  %v84_v41 = vsel %vm72_vm1, %v62_v35, %v65_v36  ;;  %v81_v43 = vsel %vm75_vm2, %v68_v37, 920167782 }
  0x95   :  { %v85_v44 = vsel %vm75_vm2, %v71_v38, 1326507024  ;;  %v82_v45 = vsel %vm74_vm3, %v65_v36, %v81_v43  ;;  %v76_v48 = vsel %vm72_vm1, %v56_v42, %v59_v34  ;;  %v78_v49 = vsel %vm74_vm3, %v62_v35, %v77_v39 }
  0x96   :  { %v86_v46 = vsel %vm74_vm3, %v68_v37, %v85_v44  ;;  %v83_v50 = vsel %vm73_vm4, %v80_v40, %v82_v45  ;;  %v79_v56 = vsel %vm73_vm4, %v76_v48, %v78_v49  ;;  %v151_v36 = vmul.f32 %v175_v32, %v257_v4 }
  0x97   :  { %v87_v51 = vsel %vm73_vm4, %v84_v41, %v86_v46  ;;  %v269_v54 = vmul.u32.u64.low %v88_v47, %v83_v50  ;;  %v270_v55 = vmul.u32.u64.high %v88_v47, %v83_v50, %v269_v54  ;;  %v95_v58 = vmul.u32 %v88_v47, %v79_v56 }
  0x98   :  { %v266_v52 = vmul.u32.u64.low %v88_v47, %v87_v51  ;;  %v267_v53 = vmul.u32.u64.high %v88_v47, %v87_v51, %v266_v52 }
  0x99   :  { %v98_v57 = vadd.s32 1, %v270_v55 }
  0x9a   :  { %vm97_vm5 = vc.u32 %v267_v53, %v269_v54  ;;  %v96_v8 = vadd.s32 %v269_v54, %v267_v53 }
  0x9b   :  { %v99_v59 = vsel %vm97_vm5, %v98_v57, %v270_v55 }
  0x9c   :  { %v100_v60 = vadd.s32 %v99_v59, %v95_v58 }
  0x9e   :  { %v101_v61 = vadd.s32 536870912, %v100_v60 }
  0xa0   :  { %v102_v62 = vshrl.u32 %v101_v61, 30 }
  0xa2   :  { %v103_v63 = vshll.u32 %v102_v62, 30  ;;  %v126_v22 = vsub.s32 4, %v102_v62 }
  0xa4   :  { %v104_v0 = vsub.s32 %v100_v60, %v103_v63  ;;  %v127_v25 = vsel %vm42_vm7, %v126_v22, %v102_v62 }
  0xa5   :  { %v129_v26 = vsel %vm41_vm8, 0, %v127_v25 }
  0xa6   :  { %v106_v1 = vsub.s32 0, %v104_v0  ;;  %v133_v27 = vadd.s32 3, %v129_v26 }
  0xa8   :  { %v172_v2 = vmin.u32 %v106_v1, %v104_v0  ;;  %v134_v28 = vand.u32 3, %v133_v27 }
  0xaa   :  { %v108_v3 = vclz %v172_v2  ;;  %vm139_vm9 = vcmp.eq.s32.totalorder %v134_v28, 2  ;;  %vm136_vm10 = vcmp.eq.s32.totalorder %v134_v28, 0  ;;  %vm135_vm11 = vcmp.lt.s32.totalorder %v134_v28, 2 }
  0xac   :  { %v173_v5 = vadd.s32 4294967294, %v108_v3 }
  0xae   :  { %vm174_vm6 = vcmp.lt.s32.totalorder %v173_v5, 0 }
  0xaf   :  { %v111_v7 = vsel %vm174_vm6, 0, %v173_v5 }
  0xb0   :  { %v112_v9 = vsub.s32 32, %v111_v7  ;;  %v116_v10 = vsub.s32 4294967266, %v111_v7  ;;  %v113_v12 = vshll.u32 %v104_v0, %v111_v7 }
  0xb2   :  { %v114_v13 = vshrl.u32 %v96_v8, %v112_v9  ;;  %v117_v14 = vadd.s32 127, %v116_v10 }
  0xb4   :  { %v115_v15 = vor.u32 %v114_v13, %v113_v12  ;;  %v118_v16 = vshll.u32 %v117_v14, 23 }
  0xb6   :  { %v119_v17 = vor.u32 4788187, %v118_v16  ;;  %v122_v19 = vcvt.s32.f32 %v115_v15 }
  0xb8   :  { %v120_v18 = vand.u32 2147483647, %v119_v17 }
  0xba   :  { %v123_v20 = vmul.f32 %v122_v19, %v120_v18 }
  0xbc   :  { %v124_v21 = vxor.u32 2147483648, %v123_v20 }
  0xbe   :  { %v125_v23 = vsel %vm42_vm7, %v124_v21, %v123_v20 }
  0xbf   :  { %v128_v24 = vsel %vm41_vm8, %v260_v6, %v125_v23 }
  0xc0   :  { %189 = vcosq.f32 %v128_v24 }
  0xc1   :  { %191 = vsinq.f32 %v128_v24 }
  0xcd   :  { %v190_v29 = vpop.eup %189 }
  0xce   :  { %v192_v30 = vpop.eup %191  ;;  %v140_v31 = vxor.u32 2147483648, %v190_v29 }
  0xcf   :  { %v137_v33 = vxor.u32 2147483648, %v192_v30 }
  0xd0   :  { %v141_v11 = vsel %vm139_vm9, %v140_v31, %v192_v30 }
  0xd1   :  { %v138_v34 = vsel %vm136_vm10, %v190_v29, %v137_v33 }
  0xd2   :  { %v142_v35 = vsel %vm135_vm11, %v138_v34, %v141_v11 }
  0xd3   :  { %v143_v37 = vsel %vm132_vm12, nan, %v142_v35 }
  0xd4   :  { %v152_v38 = vadd.f32 %v151_v36, %v143_v37 }
  0xd6   :  { %154 = vst.msk [vmem:[#allocation2] sm:$0x3] %vm153_vm13, %v152_v38 }
  0xd7   :  { %204 = shalt.err (!%p201_p4)
}
  0xd8   :  { %164 = dma.vmem_to_hbm [thread:$0]  %s162_s21, 32, %s292_s4, [#allocation3]  }
  0xd9   :  { %213 = dma.done.wait [#allocation3], 32  }
  0xda   :  { %214 = vsyncadd [#allocation3], 4294967264 }
  0xdb   :  { %168 = vsyncpa [#allocation3], 1 }

</bundles_post_ra>
